<compile_context>
chip_gen: v5e
topology: v5e:2x2
jax: 0.10.0
libtpu: 0.0.40
codegen_flags: <defaults>
</compile_context>

<pallas_src>
import jax
import jax.numpy as jnp
from jax import lax
from jax.experimental import pallas as pl
from jax.experimental.pallas import tpu as pltpu


def mlp_edge_kernel(idx_ref, pt_ref, b1_ref, w2_ref, b2_ref, o_ref):
    # idx_ref : [2, TE] int32   row 0 = src node id, row 1 = dst node id + N
    # pt_ref  : [H, 2N] bf16    resident [P_src | P_dst]^T, P_* = h @ W1_*
    # b1_ref  : [H, 1]  f32
    # w2_ref  : [H, 1]  f32
    # b2_ref  : [1, 1]  f32
    # o_ref   : [1, TE] f32     per-edge scores (lane-dense)
    two_n = pt_ref.shape[1]
    te = idx_ref.shape[1]

    # Fused gather: combined one-hot [2N, TE] selecting one P_src column
    # (rows < N, == src) and one P_dst column (rows >= N, == dst + N) per
    # edge.  Built straight from the comparisons — no f32 intermediate.
    row_ids = lax.broadcasted_iota(jnp.int32, (two_n, te), 0)
    idx = idx_ref[...]
    sel = jnp.logical_or(row_ids == idx[0:1, :], row_ids == idx[1:2, :])
    oh = sel.astype(pt_ref.dtype)                          # exact 0/1 in bf16

    # Single MXU product per tile: z^T = P^T @ onehot + b1 -> [H, TE], f32 acc
    # (exactly two nonzero bf16 terms per column -> exact gather-sum).
    z = jnp.dot(pt_ref[...], oh, preferred_element_type=jnp.float32) + b1_ref[...]
    z = jnp.maximum(z, 0.0)                                # ReLU (f32, VPU)

    # Layer 2 (out_features = 1): VPU multiply + sublane reduce -> lane-dense
    # [1, TE] store (no narrow-N matmul, no (TE, 1) masked stores).
    s = jnp.sum(z * w2_ref[...], axis=0, keepdims=True) + b2_ref[...]
    o_ref[...] = s.astype(o_ref.dtype)


def _pick_edge_tile(num_edges):
    """Generation-aware edge-tile heuristic (per perf review)."""
    e128 = max(128, pl.cdiv(num_edges, 128) * 128)
    try:
        kind = jax.devices()[0].device_kind.lower()
        multi_tc = "7" in kind          # v7x: 2 TensorCores share the grid
    except Exception:
        multi_tc = False
    if multi_tc:
        # >=4 balanced steps keeps both TCs busy and hides the tiny DMAs.
        if e128 <= 512:
            return e128
        return min(2048, pl.cdiv(max(128, e128 // 4), 128) * 128)
    # Single-TC (v5e/v6e): one grid step removes per-step pipeline overhead.
    return e128 if e128 <= 4096 else 2048


def mlp_predictor_scores(h, src, dst, w1, b1, w2, b2, *, edge_tile=None):
    """Per-edge scores, identical math to MLPPredictor.forward.

    h   : [N, H] node features (f32)
    src : [E] int32 source node ids
    dst : [E] int32 destination node ids
    w1  : [2H, H], b1: [H]   (weights stored [in, out] = torch weight.T)
    w2  : [H, 1],  b2: [1]
    returns: [E] float32 scores
    """
    E = src.shape[0]
    N, H = h.shape
    assert w1.shape == (2 * H, H)
    if E == 0:                                   # explicit empty-graph guard
        return jnp.zeros((0,), jnp.float32)

    if edge_tile is None:
        edge_tile = _pick_edge_tile(E)
    e_pad = pl.cdiv(E, edge_tile) * edge_tile
    pad = e_pad - E

    # One streamed [2, E] int32 input; dst is pre-shifted by +N so the kernel
    # needs no in-kernel offset.  Padded columns select node 0 (garbage
    # scores, sliced off below) — never out of bounds.
    idx = jnp.stack([src.astype(jnp.int32), dst.astype(jnp.int32) + N], axis=0)
    idx = jnp.pad(idx, ((0, 0), (0, pad)))

    # Hoist W1 ahead of the gather (gather and a linear layer commute):
    #   z[e] = (h @ W1_src)[src[e]] + (h @ W1_dst)[dst[e]] + b1
    # Resident operand: P^T = [P_src | P_dst]^T as bf16 [H, 2N].
    p_src = jnp.dot(h, w1[:H, :], precision=lax.Precision.HIGHEST)    # [N, H]
    p_dst = jnp.dot(h, w1[H:, :], precision=lax.Precision.HIGHEST)    # [N, H]
    pt = jnp.concatenate([p_src, p_dst], axis=0).T.astype(jnp.bfloat16)  # [H, 2N]

    b1_col = b1.reshape(H, 1).astype(jnp.float32)
    w2_col = w2.reshape(H, 1).astype(jnp.float32)
    b2_2d = b2.reshape(1, 1).astype(jnp.float32)

    grid = (e_pad // edge_tile,)

    flops = int(e_pad) * (4 * N * H + 3 * H)          # gather-matmul + layer 2
    bytes_accessed = (int(e_pad) * (2 * 4 + 4)        # idx in, scores out
                      + pt.size * 2
                      + (b1_col.size + w2_col.size + b2_2d.size) * 4)

    scores_padded = pl.pallas_call(
        mlp_edge_kernel,
        out_shape=jax.ShapeDtypeStruct((1, e_pad), jnp.float32),
        grid_spec=pltpu.PrefetchScalarGridSpec(
            num_scalar_prefetch=0,
            grid=grid,
            in_specs=[
                pl.BlockSpec((2, edge_tile), lambda i: (0, i)),   # src/dst tile
                pl.BlockSpec((H, 2 * N), lambda i: (0, 0)),       # P^T (resident)
                pl.BlockSpec((H, 1), lambda i: (0, 0)),           # b1
                pl.BlockSpec((H, 1), lambda i: (0, 0)),           # w2
                pl.BlockSpec((1, 1), lambda i: (0, 0)),           # b2
            ],
            out_specs=pl.BlockSpec((1, edge_tile), lambda i: (0, i)),
        ),
        compiler_params=pltpu.CompilerParams(
            dimension_semantics=("parallel",),
            vmem_limit_bytes=32 * 1024 * 1024,
        ),
        cost_estimate=pl.CostEstimate(
            flops=flops, transcendentals=0, bytes_accessed=bytes_accessed),
    )(idx, pt, b1_col, w2_col, b2_2d)

    return scores_padded[0, :E]


if __name__ == "__main__":
    key = jax.random.PRNGKey(0)
    k_h, k_src, k_dst, k_w1, k_b1, k_w2, k_b2 = jax.random.split(key, 7)

    N = 16      # nodes
    H = 32      # h_feats
    E = 1024    # edges

    # Node features and a synthetic edge list (stand-in for the Cora graph).
    h = jax.random.normal(k_h, (N, H), dtype=jnp.float32)
    src = jax.random.randint(k_src, (E,), 0, N, dtype=jnp.int32)
    dst = jax.random.randint(k_dst, (E,), 0, N, dtype=jnp.int32)

    # Parameters stored as [in, out] (transpose of torch nn.Linear's [out, in]).
    w1 = jax.random.normal(k_w1, (2 * H, H), dtype=jnp.float32) * 0.1
    b1 = jax.random.normal(k_b1, (H,), dtype=jnp.float32) * 0.1
    w2 = jax.random.normal(k_w2, (H, 1), dtype=jnp.float32) * 0.1
    b2 = jax.random.normal(k_b2, (1,), dtype=jnp.float32) * 0.1

    scores = mlp_predictor_scores(h, src, dst, w1, b1, w2, b2)
    scores = jax.block_until_ready(scores)
    assert scores.shape == (E,)

    # Reference 1 (tight): exactly the kernel's math — f32 projection of h by
    # the two W1 halves, rounded to bf16 AFTER the projection (the hoisted-W1
    # rounding point), then exact f32 gather-sum / ReLU / layer 2.
    p_src_q = jnp.dot(h, w1[:H], precision=lax.Precision.HIGHEST
                      ).astype(jnp.bfloat16).astype(jnp.float32)
    p_dst_q = jnp.dot(h, w1[H:], precision=lax.Precision.HIGHEST
                      ).astype(jnp.bfloat16).astype(jnp.float32)
    z_ref = jnp.maximum(p_src_q[src] + p_dst_q[dst] + b1, 0.0)
    ref_q = (jnp.dot(z_ref, w2, precision=lax.Precision.HIGHEST) + b2)[:, 0]
    assert jnp.allclose(scores, ref_q, atol=1e-3, rtol=1e-3), \
        float(jnp.max(jnp.abs(scores - ref_q)))

    # Reference 2 (loose): the original full-f32 module math.
    x_ref = jnp.concatenate([h[src], h[dst]], axis=1)
    zf = jnp.maximum(jnp.dot(x_ref, w1, precision=lax.Precision.HIGHEST) + b1, 0.0)
    ref = (jnp.dot(zf, w2, precision=lax.Precision.HIGHEST) + b2)[:, 0]
    assert jnp.allclose(scores, ref, atol=5e-2, rtol=5e-2), \
        float(jnp.max(jnp.abs(scores - ref)))

    print("KERNEL_OK")
</pallas_src>

<mosaic_0001>
module attributes {stable_mosaic.version = 11 : i64} {
  func.func @mlp_edge_kernel(%arg0: i32, %arg1: memref<2x1024xi32, #tpu.memory_space<vmem>>, %arg2: memref<32x32xbf16, #tpu.memory_space<vmem>>, %arg3: memref<32x1xf32, #tpu.memory_space<vmem>>, %arg4: memref<32x1xf32, #tpu.memory_space<vmem>>, %arg5: memref<1x1xf32, #tpu.memory_space<vmem>>, %arg6: memref<1x1024xf32, #tpu.memory_space<vmem>>) attributes {dimension_semantics = [#tpu.dimension_semantics<parallel>], iteration_bounds = array<i64: 1>, scalar_prefetch = 0 : i64, scratch_operands = 0 : i64, tpu.core_type = #tpu.core_type<tc>, window_params = [{transform_indices = @transform_0, window_bounds = array<i64: 2, 1024>}, {pipeline_mode = #tpu.pipeline_mode<synchronous>, transform_indices = @transform_1, window_bounds = array<i64: 32, 32>}, {pipeline_mode = #tpu.pipeline_mode<synchronous>, transform_indices = @transform_2, window_bounds = array<i64: 32, 1>}, {pipeline_mode = #tpu.pipeline_mode<synchronous>, transform_indices = @transform_3, window_bounds = array<i64: 32, 1>}, {pipeline_mode = #tpu.pipeline_mode<synchronous>, transform_indices = @transform_4, window_bounds = array<i64: 1, 1>}, {transform_indices = @transform_5, window_bounds = array<i64: 1, 1024>}]} {
    %0 = tpu.iota {dimensions = array<i32: 0>} : vector<32x1024xi32>
    %c0 = arith.constant 0 : index
    %c0_0 = arith.constant 0 : index
    %1 = vector.load %arg1[%c0, %c0_0] : memref<2x1024xi32, #tpu.memory_space<vmem>>, vector<2x1024xi32>
    %2 = vector.extract_strided_slice %1 {offsets = [0, 0], sizes = [1, 1024], strides = [1, 1]} : vector<2x1024xi32> to vector<1x1024xi32>
    %3 = vector.broadcast %2 : vector<1x1024xi32> to vector<32x1024xi32>
    %4 = arith.cmpi eq, %0, %3 : vector<32x1024xi32>
    %5 = vector.extract_strided_slice %1 {offsets = [1, 0], sizes = [1, 1024], strides = [1, 1]} : vector<2x1024xi32> to vector<1x1024xi32>
    %6 = vector.broadcast %5 : vector<1x1024xi32> to vector<32x1024xi32>
    %7 = arith.cmpi eq, %0, %6 : vector<32x1024xi32>
    %8 = arith.ori %4, %7 : vector<32x1024xi1>
    %9 = arith.extui %8 : vector<32x1024xi1> to vector<32x1024xi32>
    %10 = arith.sitofp %9 : vector<32x1024xi32> to vector<32x1024xf32>
    %11 = arith.truncf %10 : vector<32x1024xf32> to vector<32x1024xbf16>
    %c0_1 = arith.constant 0 : index
    %c0_2 = arith.constant 0 : index
    %12 = vector.load %arg2[%c0_1, %c0_2] : memref<32x32xbf16, #tpu.memory_space<vmem>>, vector<32x32xbf16>
    %cst = arith.constant dense<0.000000e+00> : vector<32x1024xf32>
    %13 = tpu.matmul %12, %11, %cst {dimension_numbers = #tpu.dot_dimension_numbers<[1], [0], [0], [1], [0, 0, 1, 1], [], []>} : vector<32x32xbf16>, vector<32x1024xbf16>, vector<32x1024xf32> -> vector<32x1024xf32>
    %c0_3 = arith.constant 0 : index
    %c0_4 = arith.constant 0 : index
    %14 = vector.load %arg3[%c0_3, %c0_4] : memref<32x1xf32, #tpu.memory_space<vmem>>, vector<32x1xf32>
    %15 = vector.broadcast %14 : vector<32x1xf32> to vector<32x1024xf32>
    %16 = arith.addf %13, %15 : vector<32x1024xf32>
    %cst_5 = arith.constant 0.000000e+00 : f32
    %17 = vector.broadcast %cst_5 : f32 to vector<32x1024xf32>
    %18 = arith.maximumf %16, %17 : vector<32x1024xf32>
    %c0_6 = arith.constant 0 : index
    %c0_7 = arith.constant 0 : index
    %19 = vector.load %arg4[%c0_6, %c0_7] : memref<32x1xf32, #tpu.memory_space<vmem>>, vector<32x1xf32>
    %20 = vector.broadcast %19 : vector<32x1xf32> to vector<32x1024xf32>
    %21 = arith.mulf %18, %20 : vector<32x1024xf32>
    %cst_8 = arith.constant dense<0.000000e+00> : vector<1024xf32>
    %22 = vector.multi_reduction <add>, %21, %cst_8 [0] : vector<32x1024xf32> to vector<1024xf32>
    %23 = vector.shape_cast %22 : vector<1024xf32> to vector<1x1024xf32>
    %c0_9 = arith.constant 0 : index
    %c0_10 = arith.constant 0 : index
    %24 = vector.load %arg5[%c0_9, %c0_10] : memref<1x1xf32, #tpu.memory_space<vmem>>, vector<1x1xf32>
    %25 = vector.broadcast %24 : vector<1x1xf32> to vector<1x1024xf32>
    %26 = arith.addf %23, %25 : vector<1x1024xf32>
    %c0_11 = arith.constant 0 : index
    %c0_12 = arith.constant 0 : index
    %27 = vector.load %arg6[%c0_11, %c0_12] : memref<1x1024xf32, #tpu.memory_space<vmem>>, vector<1x1024xf32>
    tpu.vector_store %arg6[%c0_11, %c0_12], %26 {strides = array<i32>} : memref<1x1024xf32, #tpu.memory_space<vmem>>, vector<1x1024xf32>,
    return
  }
  func.func @transform_0(%arg0: i32) -> (i32, i32) {
    %c0_i32 = arith.constant 0 : i32
    %c0_i32_0 = arith.constant 0 : i32
    return %c0_i32, %arg0 : i32, i32
  }
  func.func @transform_1(%arg0: i32) -> (i32, i32) {
    %c0_i32 = arith.constant 0 : i32
    %c0_i32_0 = arith.constant 0 : i32
    %c0_i32_1 = arith.constant 0 : i32
    return %c0_i32, %c0_i32_0 : i32, i32
  }
  func.func @transform_2(%arg0: i32) -> (i32, i32) {
    %c0_i32 = arith.constant 0 : i32
    %c0_i32_0 = arith.constant 0 : i32
    %c0_i32_1 = arith.constant 0 : i32
    return %c0_i32, %c0_i32_0 : i32, i32
  }
  func.func @transform_3(%arg0: i32) -> (i32, i32) {
    %c0_i32 = arith.constant 0 : i32
    %c0_i32_0 = arith.constant 0 : i32
    %c0_i32_1 = arith.constant 0 : i32
    return %c0_i32, %c0_i32_0 : i32, i32
  }
  func.func @transform_4(%arg0: i32) -> (i32, i32) {
    %c0_i32 = arith.constant 0 : i32
    %c0_i32_0 = arith.constant 0 : i32
    %c0_i32_1 = arith.constant 0 : i32
    return %c0_i32, %c0_i32_0 : i32, i32
  }
  func.func @transform_5(%arg0: i32) -> (i32, i32) {
    %c0_i32 = arith.constant 0 : i32
    %c0_i32_0 = arith.constant 0 : i32
    return %c0_i32, %arg0 : i32, i32
  }
}

</mosaic_0001>

<bundles_post_ra>
// kernel: tpu_custom_call.1
= control target key start
LH: loop header
LB: loop body
LE: loop exit
PB: predicated region body
PF: predicated region fallthrough
CT: control target
= control target key end

     0   :  { %s1170_s0 = inlined_call_operand.vmem [shape: s32[2,1024], index: 0, kind: input, shape index: {}]   ;;  %s1171_s1 = inlined_call_operand.vmem [shape: bf16[32,32], index: 1, kind: input, shape index: {}]   ;;  %s1172_s2 = inlined_call_operand.vmem [shape: f32[32,1], index: 2, kind: input, shape index: {}]   ;;  %s1173_s3 = inlined_call_operand.vmem [shape: f32[32,1], index: 3, kind: input, shape index: {}]   ;;  %s1174_s4 = inlined_call_operand.<no memory space> [shape: f32[1,1], index: 4, kind: input, shape index: {}]   ;;  %s1175_s5 = inlined_call_operand.hbm [shape: f32[1,1024], index: 5, kind: output, shape index: {}]  }
   0x1   :  { %v10_v0 = vstv %s1174_s4 }
   0x2   :  { %11 = vst [vmem:[#allocation2] sm:$0x1] %v10_v0 }
   0x3   :  { %v24_v1 = vlaneseq  ;;  %v29_v2 = vld [vmem:[%s1170_s0] sm:$0xff] }
   0x4   :  { %v31_v3 = vperm.slane %v29_v2, 0  ;;  %v79_v4 = vperm.slane %v29_v2, 1  ;;  %v32_v5 = vperm.slane %v29_v2, 2  ;;  %v80_v6 = vperm.slane %v29_v2, 3 }
   0x5   :  { %12 = vsyncpa [#allocation4], 0  ;;  %v819_v7 = vshrl.u32 %v24_v1, 7  ;;  %v33_v8 = vperm.slane %v29_v2, 4  ;;  %v81_v9 = vperm.slane %v29_v2, 5  ;;  %v34_v18 = vperm.slane %v29_v2, 6 }
   0x6   :  { %v39_v10 = vperm.slane %v31_v3, 0  ;;  %v87_v11 = vperm.slane %v79_v4, 1  ;;  %v821_v12 = vperm.slane %v32_v5, 0  ;;  %v823_v13 = vperm.slane %v80_v6, 1  ;;  %v880_v24 = vld [vmem:[%s1170_s0 + $0x8] sm:$0xff]  ;;  %v896_v27 = vld [vmem:[%s1171_s1] sm:$0xff] }
   0x7   :  { %v826_v14 = vadd.s32 16, %v819_v7  ;;  %v829_v15 = vadd.s32 24, %v819_v7  ;;  %v831_v16 = vperm.slane %v33_v8, 0  ;;  %v833_v17 = vperm.slane %v81_v9, 1  ;;  %v243_v28 = vld [vmem:[%s1172_s2] sm:$0xff]  ;;  %v245_v33 = vld [vmem:[%s1172_s2 + $0x10] sm:$0xff] }
   0x8   :  { %v82_v19 = vperm.slane %v29_v2, 7  ;;  %v847_v20 = vperm.slane %v34_v18, 0  ;;  %v780_v22 = vmov 1.0|1.0   ;;  %v866_v23 = vadd.s32 8, %v819_v7  ;;  %v244_v42 = vld [vmem:[%s1172_s2 + $0x8] sm:$0xff] }
   0x9   :  { %vm63_vm0 = vcmp.eq.s32.totalorder %v826_v14, %v39_v10  ;;  %vm71_vm1 = vcmp.eq.s32.totalorder %v829_v15, %v39_v10  ;;  %vm111_vm2 = vcmp.eq.s32.totalorder %v826_v14, %v87_v11  ;;  %vm119_vm3 = vcmp.eq.s32.totalorder %v829_v15, %v87_v11  ;;  %v246_v45 = vld [vmem:[%s1172_s2 + $0x18] sm:$0xff]  ;;  %v468_v48 = vld [vmem:[%s1173_s3] sm:$0xff]  ;;  %v747_v49 = vld [vmem:[%s1171_s1 + $0x8] sm:$0xff]  ;;  %s649_s18 = sshll.u32 %s1175_s5, 4  ;;  %s650_s18 = int_to_ptr.hbm [resolvable:$true] %s649_s18 }
   0xa   :  { %vm143_vm4 = vmor %vm63_vm0, %vm111_vm2  ;;  %vm64_vm5 = vcmp.eq.s32.totalorder %v826_v14, %v821_v12  ;;  %vm112_vm6 = vcmp.eq.s32.totalorder %v826_v14, %v823_v13  ;;  %vm72_vm8 = vcmp.eq.s32.totalorder %v829_v15, %v821_v12  ;;  %vm120_vm9 = vcmp.eq.s32.totalorder %v829_v15, %v823_v13  ;;  %v470_v50 = vld [vmem:[%s1173_s3 + $0x10] sm:$0xff]  ;;  %v471_v51 = vld [vmem:[%s1173_s3 + $0x18] sm:$0xff] }
   0xb   :  { %vm151_vm7 = vmor %vm71_vm1, %vm119_vm3  ;;  %v849_v21 = vperm.slane %v82_v19, 1  ;;  %vm65_vm12 = vcmp.eq.s32.totalorder %v826_v14, %v831_v16  ;;  %vm113_vm13 = vcmp.eq.s32.totalorder %v826_v14, %v833_v17  ;;  %vm73_vm15 = vcmp.eq.s32.totalorder %v829_v15, %v831_v16  ;;  %v469_v52 = vld [vmem:[%s1173_s3 + $0x8] sm:$0xff]  ;;  %v596_v53 = vld [vmem:[#allocation2] sm:$0x1]  ;;  %s782_s3 = smov [#allocation3]  }
   0xc   :  { %vm698_vm10 = vmpackc.low %vm151_vm7, %vm143_vm4  ;;  %vm121_vm0 = vcmp.eq.s32.totalorder %v829_v15, %v833_v17  ;;  %vm66_vm3 = vcmp.eq.s32.totalorder %v826_v14, %v847_v20  ;;  %v37_v25 = vperm.slane %v880_v24, 4  ;;  %v85_v26 = vperm.slane %v880_v24, 5  ;;  %s647_s15 = sshll.u32 %s782_s3, 4  ;;  %s648_s15 = int_to_ptr.vmem [resolvable:$true] %s647_s15 }
   0xd   :  { %699 = vmatpush.bf16.msk.msra.mxu0 %vm698_vm10, %v780_v22  ;;  %vm144_vm11 = vmor %vm64_vm5, %vm112_vm6  ;;  %vm114_vm4 = vcmp.eq.s32.totalorder %v826_v14, %v849_v21  ;;  %vm74_vm6 = vcmp.eq.s32.totalorder %v829_v15, %v847_v20  ;;  %vm122_vm7 = vcmp.eq.s32.totalorder %v829_v15, %v849_v21  ;;  %vm47_vm10 = vcmp.eq.s32.totalorder %v819_v7, %v39_v10 }
   0xe   :  { %vm152_vm14 = vmor %vm72_vm8, %vm120_vm9  ;;  %v38_v30 = vperm.slane %v880_v24, 6  ;;  %v86_v31 = vperm.slane %v880_v24, 7  ;;  %v781_v32 = vmov 0   ;;  %v921_v34 = vperm.slane %v37_v25, 0 }
   0xf   :  { %vm704_vm1 = vmpackc.low %vm152_vm14, %vm144_vm11  ;;  %vm95_vm11 = vcmp.eq.s32.totalorder %v819_v7, %v87_v11  ;;  %vm103_vm14 = vcmp.eq.s32.totalorder %v866_v23, %v87_v11  ;;  %751 = vset.pattern.permute.xlu0 %v781_v32  ;;  %v923_v35 = vperm.slane %v85_v26, 1  ;;  %752 = vset.pattern.permute.xlu1 %v781_v32  ;;  %v35_v36 = vperm.slane %v880_v24, 0 }
  0x10   :  { %705 = vmatpush.bf16.msk.msra.mxu1 %vm704_vm1, %v780_v22  ;;  %vm145_vm2 = vmor %vm65_vm12, %vm113_vm13  ;;  %vm55_vm13 = vcmp.eq.s32.totalorder %v866_v23, %v39_v10  ;;  %vm48_vm1 = vcmp.eq.s32.totalorder %v819_v7, %v821_v12  ;;  %249 = vperm.xlu0 %751, %v243_v28   ;;  %v83_v37 = vperm.slane %v880_v24, 1  ;;  %v950_v38 = vperm.slane %v38_v30, 0 }
  0x11   :  { %vm153_vm5 = vmor %vm73_vm15, %vm121_vm0  ;;  %259 = vperm.xlu1 %752, %v245_v33   ;;  %753 = vset.pattern.permute.xlu2 %v781_v32  ;;  %v952_v39 = vperm.slane %v86_v31, 1  ;;  %v36_v40 = vperm.slane %v880_v24, 2  ;;  %v84_v41 = vperm.slane %v880_v24, 3  ;;  %v970_v43 = vperm.slane %v35_v36, 0 }
  0x12   :  { %vm710_vm8 = vmpackc.low %vm153_vm5, %vm145_vm2  ;;  %vm96_vm2 = vcmp.eq.s32.totalorder %v819_v7, %v823_v13  ;;  %vm104_vm5 = vcmp.eq.s32.totalorder %v866_v23, %v823_v13  ;;  %v972_v44 = vperm.slane %v83_v37, 1  ;;  %474 = vperm.xlu2 %753, %v468_v48  }
  0x13   :  { %711 = vmatpush.bf16.msk.msra.mxu2 %vm710_vm8, %v780_v22  ;;  %vm146_vm9 = vmor %vm66_vm3, %vm114_vm4  ;;  %vm56_vm4 = vcmp.eq.s32.totalorder %v866_v23, %v821_v12  ;;  %vm49_vm8 = vcmp.eq.s32.totalorder %v819_v7, %v831_v16  ;;  %v988_v46 = vperm.slane %v36_v40, 0  ;;  %v990_v47 = vperm.slane %v84_v41, 1 }
  0x14   :  { %vm154_vm12 = vmor %vm74_vm6, %vm122_vm7 }
  0x15   :  { %vm716_vm15 = vmpackc.low %vm154_vm12, %vm146_vm9  ;;  %vm97_vm9 = vcmp.eq.s32.totalorder %v819_v7, %v833_v17  ;;  %vm57_vm12 = vcmp.eq.s32.totalorder %v866_v23, %v831_v16 }
  0x16   :  { %717 = vmatpush.bf16.msk.msra.mxu3 %vm716_vm15, %v780_v22  ;;  %vm127_vm0 = vmor %vm47_vm10, %vm95_vm11  ;;  %vm277_vm10 = vcmask 261120  }
  0x17   :  { %vm135_vm3 = vmor %vm55_vm13, %vm103_vm14  ;;  %vm105_vm13 = vcmp.eq.s32.totalorder %v866_v23, %v833_v17 }
  0x18   :  { %vm700_vm6 = vmpackc.low %vm135_vm3, %vm127_vm0  ;;  %vm50_vm0 = vcmp.eq.s32.totalorder %v819_v7, %v847_v20  ;;  %vm58_vm3 = vcmp.eq.s32.totalorder %v866_v23, %v847_v20  ;;  %254 = vperm.xlu0 %751, %v244_v42  }
  0x19   :  { %701 = vmatpush.bf16.msk.msra.mxu0 %vm700_vm6, %v780_v22  ;;  %vm902_vm7 = vmor %vm48_vm1, %vm96_vm2  ;;  %vm98_vm1 = vcmp.eq.s32.totalorder %v819_v7, %v849_v21  ;;  %264 = vperm.xlu1 %752, %v246_v45  }
  0x1a   :  { %vm136_vm11 = vmor %vm56_vm4, %vm104_vm5  ;;  %vm106_vm4 = vcmp.eq.s32.totalorder %v866_v23, %v849_v21  ;;  %479 = vperm.xlu2 %753, %v469_v52  }
  0x1b   :  { %vm706_vm14 = vmpackc.low %vm136_vm11, %vm902_vm7  ;;  %vm69_vm7 = vcmp.eq.s32.totalorder %v826_v14, %v921_v34  ;;  %vm77_vm11 = vcmp.eq.s32.totalorder %v829_v15, %v921_v34 }
  0x1c   :  { %707 = vmatpush.bf16.msk.msra.mxu1 %vm706_vm14, %v780_v22  ;;  %vm129_vm15 = vmor %vm49_vm8, %vm97_vm9  ;;  %702 = vmatmul.msk.bf16.vlgmr.msra.gmra.mxu0 %vm277_vm10, %v896_v27  ;;  %vm117_vm8 = vcmp.eq.s32.totalorder %v826_v14, %v923_v35 }
  0x1d   :  { %vm137_vm2 = vmor %vm57_vm12, %vm105_vm13  ;;  %vm125_vm12 = vcmp.eq.s32.totalorder %v829_v15, %v923_v35 }
  0x1e   :  { %vm712_vm5 = vmpackc.low %vm137_vm2, %vm129_vm15  ;;  %vm70_vm15 = vcmp.eq.s32.totalorder %v826_v14, %v950_v38  ;;  %vm78_vm2 = vcmp.eq.s32.totalorder %v829_v15, %v950_v38 }
  0x1f   :  { %713 = vmatpush.bf16.msk.msra.mxu2 %vm712_vm5, %v780_v22  ;;  %vm130_vm6 = vmor %vm50_vm0, %vm98_vm1  ;;  %708 = vmatmul.msk.bf16.vlgmr.msra.gmra.mxu1 %vm277_vm10, %v896_v27  ;;  %vm118_vm0 = vcmp.eq.s32.totalorder %v826_v14, %v952_v39 }
  0x20   :  { %vm138_vm9 = vmor %vm58_vm3, %vm106_vm4  ;;  %vm126_vm3 = vcmp.eq.s32.totalorder %v829_v15, %v952_v39  ;;  %484 = vperm.xlu0 %751, %v470_v50  }
  0x21   :  { %vm718_vm13 = vmpackc.low %vm138_vm9, %vm130_vm6  ;;  %vm67_vm6 = vcmp.eq.s32.totalorder %v826_v14, %v970_v43  ;;  %vm75_vm9 = vcmp.eq.s32.totalorder %v829_v15, %v970_v43  ;;  %489 = vperm.xlu1 %752, %v471_v51  }
  0x22   :  { %719 = vmatpush.bf16.msk.msra.mxu3 %vm718_vm13, %v780_v22  ;;  %714 = vmatmul.msk.bf16.vlgmr.msra.gmra.mxu2 %vm277_vm10, %v896_v27  ;;  %vm149_vm14 = vmor %vm69_vm7, %vm117_vm8  ;;  %vm115_vm7 = vcmp.eq.s32.totalorder %v826_v14, %v972_v44 }
  0x23   :  { %vm157_vm1 = vmor %vm77_vm11, %vm125_vm12  ;;  %vm123_vm11 = vcmp.eq.s32.totalorder %v829_v15, %v972_v44  ;;  %599 = vperm.xlu2 %753, %v596_v53  }
  0x24   :  { %vm734_vm4 = vmpackc.low %vm157_vm1, %vm149_vm14  ;;  %vm68_vm14 = vcmp.eq.s32.totalorder %v826_v14, %v988_v46  ;;  %vm76_vm1 = vcmp.eq.s32.totalorder %v829_v15, %v988_v46 }
  0x25   :  { %720 = vmatmul.msk.bf16.vlgmr.msra.gmra.mxu3 %vm277_vm10, %v896_v27  ;;  %735 = vmatpush.bf16.msk.msrb.mxu2 %vm734_vm4, %v780_v22  ;;  %vm150_vm5 = vmor %vm70_vm15, %vm118_vm0  ;;  %vm116_vm15 = vcmp.eq.s32.totalorder %v826_v14, %v990_v47 }
  0x26   :  { %vm158_vm8 = vmor %vm78_vm2, %vm126_vm3  ;;  %vm124_vm2 = vcmp.eq.s32.totalorder %v829_v15, %v990_v47 }
  0x27   :  { %vm740_vm12 = vmpackc.low %vm158_vm8, %vm150_vm5  ;;  %vm53_vm5 = vcmp.eq.s32.totalorder %v819_v7, %v921_v34  ;;  %vm61_vm8 = vcmp.eq.s32.totalorder %v866_v23, %v921_v34 }
  0x28   :  { %741 = vmatpush.bf16.msk.msrb.mxu3 %vm740_vm12, %v780_v22  ;;  %vm147_vm13 = vmor %vm67_vm6, %vm115_vm7  ;;  %vm101_vm6 = vcmp.eq.s32.totalorder %v819_v7, %v923_v35 }
  0x29   :  { %vm155_vm0 = vmor %vm75_vm9, %vm123_vm11  ;;  %vm109_vm9 = vcmp.eq.s32.totalorder %v866_v23, %v923_v35 }
  0x2a   :  { %vm722_vm3 = vmpackc.low %vm155_vm0, %vm147_vm13  ;;  %vm54_vm13 = vcmp.eq.s32.totalorder %v819_v7, %v950_v38  ;;  %vm62_vm0 = vcmp.eq.s32.totalorder %v866_v23, %v950_v38 }
  0x2b   :  { %723 = vmatpush.bf16.msk.msrb.mxu0 %vm722_vm3, %v780_v22  ;;  %vm148_vm4 = vmor %vm68_vm14, %vm116_vm15  ;;  %vm102_vm14 = vcmp.eq.s32.totalorder %v819_v7, %v952_v39 }
  0x2c   :  { %vm156_vm7 = vmor %vm76_vm1, %vm124_vm2  ;;  %703 = vmatmul.msk.bf16.gmra.mxu0 %vm277_vm10, %v747_v49  ;;  %vm110_vm1 = vcmp.eq.s32.totalorder %v866_v23, %v952_v39 }
  0x2d   :  { %vm728_vm11 = vmpackc.low %vm156_vm7, %vm148_vm4  ;;  %vm51_vm4 = vcmp.eq.s32.totalorder %v819_v7, %v970_v43  ;;  %vm59_vm7 = vcmp.eq.s32.totalorder %v866_v23, %v970_v43 }
  0x2e   :  { %729 = vmatpush.bf16.msk.msrb.mxu1 %vm728_vm11, %v780_v22  ;;  %vm133_vm12 = vmor %vm53_vm5, %vm101_vm6  ;;  %vm99_vm5 = vcmp.eq.s32.totalorder %v819_v7, %v972_v44 }
  0x2f   :  { %709 = vmatmul.msk.bf16.gmra.mxu1 %vm277_vm10, %v747_v49  ;;  %vm141_vm15 = vmor %vm61_vm8, %vm109_vm9  ;;  %vm107_vm8 = vcmp.eq.s32.totalorder %v866_v23, %v972_v44 }
  0x30   :  { %vm736_vm2 = vmpackc.low %vm141_vm15, %vm133_vm12  ;;  %vm52_vm12 = vcmp.eq.s32.totalorder %v819_v7, %v988_v46  ;;  %vm60_vm15 = vcmp.eq.s32.totalorder %v866_v23, %v988_v46 }
  0x31   :  { %737 = vmatpush.bf16.msk.msrb.mxu2 %vm736_vm2, %v780_v22  ;;  %vm134_vm3 = vmor %vm54_vm13, %vm102_vm14  ;;  %vm100_vm13 = vcmp.eq.s32.totalorder %v819_v7, %v990_v47 }
  0x32   :  { %715 = vmatmul.msk.bf16.gmra.mxu2 %vm277_vm10, %v747_v49  ;;  %vm142_vm6 = vmor %vm62_vm0, %vm110_vm1  ;;  %vm108_vm0 = vcmp.eq.s32.totalorder %v866_v23, %v990_v47 }
  0x33   :  { %vm742_vm9 = vmpackc.low %vm142_vm6, %vm134_vm3  ;;  %vm630_vm6 = vcmask 1041408  }
  0x34   :  { %743 = vmatpush.bf16.msk.msrb.mxu3 %vm742_vm9, %v780_v22  ;;  %vm131_vm11 = vmor %vm51_vm4, %vm99_vm5  ;;  %vm626_vm5 = vcmask 1040384   ;;  %vm636_vm9 = vcmask 1045508  }
  0x35   :  { %721 = vmatmul.msk.bf16.gmra.mxu3 %vm277_vm10, %v747_v49  ;;  %vm139_vm14 = vmor %vm59_vm7, %vm107_vm8  ;;  %vm632_vm7 = vcmask 1044484   ;;  %vm634_vm8 = vcmask 1046534  }
  0x36   :  { %vm724_vm1 = vmpackc.low %vm139_vm14, %vm131_vm11  ;;  %vm638_vm11 = vcmask 1043456  }
  0x37   :  { %725 = vmatpush.bf16.msk.msrb.mxu0 %vm724_vm1, %v780_v22  ;;  %vm132_vm2 = vmor %vm52_vm12, %vm100_vm13 }
  0x38   :  { %vm140_vm3 = vmor %vm60_vm15, %vm108_vm0 }
  0x39   :  { %vm730_vm4 = vmpackc.low %vm140_vm3, %vm132_vm2 }
  0x3a   :  { %731 = vmatpush.bf16.msk.msrb.mxu1 %vm730_vm4, %v780_v22 }
  0x3c   :  { %726 = vmatmul.msk.bf16.vlgmr.msrb.gmra.mxu0 %vm277_vm10, %v896_v27 }
  0x3f   :  { %732 = vmatmul.msk.bf16.vlgmr.msrb.gmra.mxu1 %vm277_vm10, %v896_v27 }
  0x42   :  { %738 = vmatmul.msk.bf16.vlgmr.msrb.gmra.mxu2 %vm277_vm10, %v896_v27 }
  0x45   :  { %744 = vmatmul.msk.bf16.vlgmr.msrb.gmra.mxu3 %vm277_vm10, %v896_v27 }
  0x4c   :  { %727 = vmatmul.msk.bf16.gmra.mxu0 %vm277_vm10, %v747_v49 }
  0x4f   :  { %733 = vmatmul.msk.bf16.gmra.mxu1 %vm277_vm10, %v747_v49 }
  0x52   :  { %739 = vmatmul.msk.bf16.gmra.mxu2 %vm277_vm10, %v747_v49 }
  0x55   :  { %745 = vmatmul.msk.bf16.gmra.mxu3 %vm277_vm10, %v747_v49  ;;  %vm628_vm10 = vcmask 1042434  }
  0x6c   :  { %v1085_v6 = vpop.permute.xlu2 %474 }
  0x74   :  { %v1098_v25 = vpop.permute.xlu2 %479 }
  0x82   :  { %v1081_v0 = vpop.permute.xlu0 %249 }
  0x83   :  { %v1083_v4 = vpop.permute.xlu1 %259 }
  0x8a   :  { %v1087_v8 = vpop.permute.xlu0 %254 }
  0x8b   :  { %v1096_v23 = vpop.permute.xlu1 %264 }
  0x92   :  { %v1120_v51 = vpop.permute.xlu0 %484 }
  0x99   :  { %v293_v54 = vpop.f32.mrf.mxu0 }
  0x9a   :  { %v294_v11 = vadd.f32 %v293_v54, %v1081_v0 }
  0x9c   :  { %v312_v55 = vpop.f32.mrf.mxu1  ;;  %v436_v20 = vmax.f32 %v294_v11, 0.0 }
  0x9d   :  { %v313_v12 = vadd.f32 %v312_v55, %v1081_v0 }
  0x9e   :  { %v492_v36 = vmul.f32 %v1085_v6, %v436_v20 }
  0x9f   :  { %v437_v21 = vmax.f32 %v313_v12, 0.0 }
  0xa1   :  { %v295_v56 = vpop.f32.mrf.mxu0  ;;  %v493_v37 = vmul.f32 %v1085_v6, %v437_v21 }
  0xa2   :  { %v296_v13 = vadd.f32 %v295_v56, %v1087_v8 }
  0xa4   :  { %v314_v57 = vpop.f32.mrf.mxu1  ;;  %v444_v22 = vmax.f32 %v296_v13, 0.0 }
  0xa5   :  { %v331_v58 = vpop.f32.mrf.mxu2  ;;  %v315_v14 = vadd.f32 %v314_v57, %v1087_v8 }
  0xa6   :  { %v332_v17 = vadd.f32 %v331_v58, %v1081_v0  ;;  %v500_v38 = vmul.f32 %v1098_v25, %v444_v22 }
  0xa7   :  { %v445_v24 = vmax.f32 %v315_v14, 0.0 }
  0xa8   :  { %v350_v59 = vpop.f32.mrf.mxu3  ;;  %v438_v31 = vmax.f32 %v332_v17, 0.0 }
  0xa9   :  { %v298_v60 = vpop.f32.mrf.mxu0  ;;  %v351_v18 = vadd.f32 %v350_v59, %v1081_v0  ;;  %v501_v40 = vmul.f32 %v1098_v25, %v445_v24  ;;  %v524_v24 = vadd.f32 %v500_v38, %v492_v36 }
  0xaa   :  { %v299_v29 = vadd.f32 %v298_v60, %v1083_v4  ;;  %v494_v49 = vmul.f32 %v1085_v6, %v438_v31 }
  0xab   :  { %v439_v32 = vmax.f32 %v351_v18, 0.0 }
  0xac   :  { %v317_v61 = vpop.f32.mrf.mxu1  ;;  %v452_v45 = vmax.f32 %v299_v29, 0.0 }
  0xad   :  { %v333_v62 = vpop.f32.mrf.mxu2  ;;  %v318_v39 = vadd.f32 %v317_v61, %v1083_v4  ;;  %v495_v50 = vmul.f32 %v1085_v6, %v439_v32 }
  0xae   :  { %v334_v15 = vadd.f32 %v333_v62, %v1087_v8 }
  0xaf   :  { %v453_v55 = vmax.f32 %v318_v39, 0.0 }
  0xb0   :  { %v352_v63 = vpop.f32.mrf.mxu3  ;;  %v446_v28 = vmax.f32 %v334_v15, 0.0 }
  0xb1   :  { %v300_v1 = vpop.f32.mrf.mxu0  ;;  %v353_v26 = vadd.f32 %v352_v63, %v1087_v8  ;;  %v509_v15 = vmul.f32 %v1120_v51, %v453_v55 }
  0xb2   :  { %v502_v44 = vmul.f32 %v1098_v25, %v446_v28  ;;  %v301_v56 = vadd.f32 %v300_v1, %v1096_v23 }
  0xb3   :  { %v447_v41 = vmax.f32 %v353_v26, 0.0  ;;  %v533_v26 = vadd.f32 %v501_v40, %v493_v37 }
  0xb4   :  { %v319_v2 = vpop.f32.mrf.mxu1  ;;  %v542_v63 = vadd.f32 %v502_v44, %v494_v49 }
  0xb5   :  { %v336_v3 = vpop.f32.mrf.mxu2  ;;  %v320_v46 = vadd.f32 %v319_v2, %v1096_v23  ;;  %v503_v59 = vmul.f32 %v1098_v25, %v447_v41  ;;  %v508_v2 = vmul.f32 %v1120_v51, %v452_v45 }
  0xb6   :  { %v337_v27 = vadd.f32 %v336_v3, %v1083_v4 }
  0xb7   :  { %v461_v3 = vmax.f32 %v320_v46, 0.0 }
  0xb8   :  { %v355_v5 = vpop.f32.mrf.mxu3  ;;  %v454_v42 = vmax.f32 %v337_v27, 0.0 }
  0xb9   :  { %v369_v7 = vpop.f32.mrf.mxu0  ;;  %v356_v33 = vadd.f32 %v355_v5, %v1083_v4  ;;  %v1129_v5 = vpop.permute.xlu1 %489 }
  0xba   :  { %v370_v57 = vadd.f32 %v369_v7, %v1081_v0  ;;  %v510_v60 = vmul.f32 %v1120_v51, %v454_v42  ;;  %v517_v27 = vmul.f32 %v1129_v5, %v461_v3 }
  0xbb   :  { %v455_v52 = vmax.f32 %v356_v33, 0.0 }
  0xbc   :  { %v388_v9 = vpop.f32.mrf.mxu1  ;;  %v440_v17 = vmax.f32 %v370_v57, 0.0  ;;  %v543_v20 = vadd.f32 %v542_v63, %v510_v60 }
  0xbd   :  { %v338_v10 = vpop.f32.mrf.mxu2  ;;  %v511_v1 = vmul.f32 %v1120_v51, %v455_v52  ;;  %v389_v12 = vadd.f32 %v388_v9, %v1081_v0 }
  0xbe   :  { %v339_v34 = vadd.f32 %v338_v10, %v1096_v23  ;;  %v496_v39 = vmul.f32 %v1085_v6, %v440_v17 }
  0xbf   :  { %v441_v31 = vmax.f32 %v389_v12, 0.0 }
  0xc0   :  { %v357_v16 = vpop.f32.mrf.mxu3  ;;  %v462_v53 = vmax.f32 %v339_v34, 0.0  ;;  %v534_v34 = vadd.f32 %v533_v26, %v509_v15 }
  0xc1   :  { %v371_v19 = vpop.f32.mrf.mxu0  ;;  %v358_v43 = vadd.f32 %v357_v16, %v1096_v23  ;;  %v460_v16 = vmax.f32 %v301_v56, 0.0 }
  0xc2   :  { %v372_v48 = vadd.f32 %v371_v19, %v1087_v8  ;;  %v518_v7 = vmul.f32 %v1129_v5, %v462_v53  ;;  %v551_v19 = vadd.f32 %v503_v59, %v495_v50  ;;  %v535_v40 = vadd.f32 %v534_v34, %v517_v27 }
  0xc3   :  { %v463_v61 = vmax.f32 %v358_v43, 0.0  ;;  %v525_v43 = vadd.f32 %v524_v24, %v508_v2  ;;  %v516_v36 = vmul.f32 %v1129_v5, %v460_v16  ;;  %v497_v50 = vmul.f32 %v1085_v6, %v441_v31 }
  0xc4   :  { %v390_v30 = vpop.f32.mrf.mxu1  ;;  %v448_v10 = vmax.f32 %v372_v48, 0.0  ;;  %v552_v29 = vadd.f32 %v551_v19, %v511_v1  ;;  %v536_v63 = vrot.slane %v535_v40, 4 }
  0xc5   :  { %v1105_v35 = vpop.f32.mrf.mxu2  ;;  %v391_v62 = vadd.f32 %v390_v30, %v1087_v8  ;;  %v519_v21 = vmul.f32 %v1129_v5, %v463_v61  ;;  %v544_v30 = vadd.f32 %v543_v20, %v518_v7  ;;  %v526_v12 = vadd.f32 %v525_v43, %v516_v36 }
  0xc6   :  { %v504_v28 = vmul.f32 %v1098_v25, %v448_v10  ;;  %v408_v55 = vadd.f32 %v1105_v35, %v1081_v0 }
  0xc7   :  { %v449_v22 = vmax.f32 %v391_v62, 0.0  ;;  %v553_v37 = vadd.f32 %v552_v29, %v519_v21  ;;  %v545_v49 = vrot.slane %v544_v30, 4  ;;  %v527_v26 = vrot.slane %v526_v12, 4 }
  0xc8   :  { %v1115_v47 = vpop.f32.mrf.mxu3  ;;  %v560_v44 = vadd.f32 %v504_v28, %v496_v39 }
  0xc9   :  { %v374_v54 = vpop.f32.mrf.mxu0  ;;  %v505_v38 = vmul.f32 %v1098_v25, %v449_v22  ;;  %v554_v59 = vrot.slane %v553_v37, 4  ;;  %v427_v2 = vadd.f32 %v1115_v47, %v1081_v0  ;;  %v546_v16 = vadd.f32 %v545_v49, %v544_v30 }
  0xca   :  { %v375_v58 = vadd.f32 %v374_v54, %v1083_v4  ;;  %v537_v0 = vadd.f32 %v536_v63, %v535_v40 }
  0xcb   :  { %v569_v60 = vadd.f32 %v505_v38, %v497_v50  ;;  %v555_v17 = vadd.f32 %v554_v59, %v553_v37  ;;  %v443_v19 = vmax.f32 %v427_v2, 0.0 }
  0xcc   :  { %v393_v11 = vpop.f32.mrf.mxu1  ;;  %v456_v18 = vmax.f32 %v375_v58, 0.0 }
  0xcd   :  { %v409_v13 = vpop.f32.mrf.mxu2  ;;  %v394_v14 = vadd.f32 %v393_v11, %v1083_v4  ;;  %v556_v29 = vrot.slane %v555_v17, 2 }
  0xce   :  { %v512_v41 = vmul.f32 %v1120_v51, %v456_v18  ;;  %v410_v45 = vadd.f32 %v409_v13, %v1087_v8  ;;  %v442_v13 = vmax.f32 %v408_v55, 0.0 }
  0xcf   :  { %v457_v32 = vmax.f32 %v394_v14, 0.0 }
  0xd0   :  { %v428_v9 = vpop.f32.mrf.mxu3  ;;  %v561_v56 = vadd.f32 %v560_v44, %v512_v41  ;;  %v450_v3 = vmax.f32 %v410_v45, 0.0  ;;  %v538_v41 = vrot.slane %v537_v0, 2  ;;  %v528_v44 = vadd.f32 %v527_v26, %v526_v12 }
  0xd1   :  { %v376_v33 = vpop.f32.mrf.mxu0  ;;  %v513_v52 = vmul.f32 %v1120_v51, %v457_v32  ;;  %v429_v61 = vadd.f32 %v428_v9, %v1087_v8  ;;  %v547_v9 = vrot.slane %v546_v16, 2  ;;  %v499_v32 = vmul.f32 %v1085_v6, %v443_v19 }
  0xd2   :  { %v377_v42 = vadd.f32 %v376_v33, %v1096_v23  ;;  %v506_v20 = vmul.f32 %v1098_v25, %v450_v3 }
  0xd3   :  { %v570_v1 = vadd.f32 %v569_v60, %v513_v52  ;;  %v451_v8 = vmax.f32 %v429_v61, 0.0  ;;  %v548_v45 = vadd.f32 %v547_v9, %v546_v16  ;;  %v600_v60 = vpop.permute.xlu2 %599 }
  0xd4   :  { %v464_v46 = vmax.f32 %v377_v42, 0.0  ;;  %v395_v48 = vpop.f32.mrf.mxu1 }
  0xd5   :  { %v412_v53 = vpop.f32.mrf.mxu2  ;;  %v396_v54 = vadd.f32 %v395_v48, %v1096_v23  ;;  %v507_v30 = vmul.f32 %v1098_v25, %v451_v8  ;;  %v549_v55 = vrot.slane %v548_v45, 1 }
  0xd6   :  { %v413_v57 = vadd.f32 %v412_v53, %v1083_v4  ;;  %v520_v58 = vmul.f32 %v1129_v5, %v464_v46  ;;  %v557_v46 = vadd.f32 %v556_v29, %v555_v17 }
  0xd7   :  { %v465_v62 = vmax.f32 %v396_v54, 0.0  ;;  %v587_v25 = vadd.f32 %v507_v30, %v499_v32  ;;  %v550_v3 = vadd.f32 %v549_v55, %v548_v45 }
  0xd8   :  { %v431_v10 = vpop.f32.mrf.mxu3  ;;  %v562_v11 = vadd.f32 %v561_v56, %v520_v58  ;;  %v458_v14 = vmax.f32 %v413_v57, 0.0  ;;  %v558_v56 = vrot.slane %v557_v46, 1 }
  0xd9   :  { %v432_v35 = vadd.f32 %v431_v10, %v1083_v4  ;;  %v521_v7 = vmul.f32 %v1129_v5, %v465_v62  ;;  %v498_v4 = vmul.f32 %v1085_v6, %v442_v13  ;;  %v539_v6 = vadd.f32 %v538_v41, %v537_v0 }
  0xda   :  { %v563_v15 = vrot.slane %v562_v11, 4  ;;  %v514_v27 = vmul.f32 %v1120_v51, %v458_v14  ;;  %v559_v10 = vadd.f32 %v558_v56, %v557_v46 }
  0xdb   :  { %v571_v18 = vadd.f32 %v570_v1, %v521_v7  ;;  %v459_v47 = vmax.f32 %v432_v35, 0.0  ;;  %v578_v33 = vadd.f32 %v506_v20, %v498_v4  ;;  %v540_v59 = vrot.slane %v539_v6, 1 }
  0xdc   :  { %v564_v21 = vadd.f32 %v563_v15, %v562_v11  ;;  %v602_v35 = vperm.slane %v600_v60, 0 }
  0xdd   :  { %v572_v22 = vrot.slane %v571_v18, 4  ;;  %v414_v24 = vpop.f32.mrf.mxu2  ;;  %v515_v42 = vmul.f32 %v1120_v51, %v459_v47  ;;  %v579_v38 = vadd.f32 %v578_v33, %v514_v27  ;;  %v541_v12 = vadd.f32 %v540_v59, %v539_v6 }
  0xde   :  { %v415_v28 = vadd.f32 %v414_v24, %v1096_v23  ;;  %v565_v43 = vrot.slane %v564_v21, 2  ;;  %v605_v8 = vadd.f32 %v602_v35, %v550_v3 }
  0xdf   :  { %v573_v31 = vadd.f32 %v572_v22, %v571_v18  ;;  %v588_v50 = vadd.f32 %v587_v25, %v515_v42  ;;  %v606_v18 = vadd.f32 %v602_v35, %v559_v10  ;;  %v604_v20 = vadd.f32 %v602_v35, %v541_v12 }
  0xe0   :  { %v466_v34 = vmax.f32 %v415_v28, 0.0  ;;  %v433_v39 = vpop.f32.mrf.mxu3  ;;  %v566_v52 = vadd.f32 %v565_v43, %v564_v21  ;;  %v620_v4 = vrot.slane %v605_v8, 6 }
  0xe1   :  { %v574_v36 = vrot.slane %v573_v31, 2  ;;  %v434_v37 = vadd.f32 %v433_v39, %v1096_v23  ;;  %v529_v23 = vrot.slane %v528_v44, 2  ;;  %v621_v27 = vrot.slane %v606_v18, 5 }
  0xe2   :  { %v522_v40 = vmul.f32 %v1129_v5, %v466_v34  ;;  %v567_v61 = vrot.slane %v566_v52, 1  ;;  %v619_v28 = vrot.slane %v604_v20, 7 }
  0xe3   :  { %v467_v48 = vmax.f32 %v434_v37, 0.0  ;;  %v575_v53 = vadd.f32 %v574_v36, %v573_v31  ;;  %v530_v1 = vadd.f32 %v529_v23, %v528_v44  ;;  %v629_v34 = vsel %vm628_vm10, %v620_v4, %v621_v27 }
  0xe4   :  { %v580_v49 = vadd.f32 %v579_v38, %v522_v40 }
  0xe5   :  { %v523_v54 = vmul.f32 %v1129_v5, %v467_v48  ;;  %v576_v62 = vrot.slane %v575_v53, 1  ;;  %v568_v5 = vadd.f32 %v567_v61, %v566_v52  ;;  %v531_v17 = vrot.slane %v530_v1, 1 }
  0xe6   :  { %v581_v51 = vrot.slane %v580_v49, 4 }
  0xe7   :  { %v589_v57 = vadd.f32 %v588_v50, %v523_v54  ;;  %v577_v13 = vadd.f32 %v576_v62, %v575_v53  ;;  %v607_v0 = vadd.f32 %v602_v35, %v568_v5  ;;  %v532_v26 = vadd.f32 %v531_v17, %v530_v1 }
  0xe8   :  { %v582_v58 = vadd.f32 %v581_v51, %v580_v49 }
  0xe9   :  { %v590_v63 = vrot.slane %v589_v57, 4  ;;  %v608_v47 = vadd.f32 %v602_v35, %v577_v13  ;;  %v622_v29 = vrot.slane %v607_v0, 4  ;;  %v603_v32 = vadd.f32 %v602_v35, %v532_v26 }
  0xea   :  { %v583_v2 = vrot.slane %v582_v58, 2 }
  0xeb   :  { %v591_v11 = vadd.f32 %v590_v63, %v589_v57  ;;  %v623_v30 = vrot.slane %v608_v47, 3  ;;  %v627_v39 = vsel %vm626_vm5, %v603_v32, %v619_v28 }
  0xec   :  { %v584_v7 = vadd.f32 %v583_v2, %v582_v58  ;;  %v631_v43 = vsel %vm630_vm6, %v627_v39, %v629_v34 }
  0xed   :  { %v592_v14 = vrot.slane %v591_v11, 2  ;;  %v633_v41 = vsel %vm632_vm7, %v622_v29, %v623_v30 }
  0xee   :  { %v585_v15 = vrot.slane %v584_v7, 1 }
  0xef   :  { %v593_v16 = vadd.f32 %v592_v14, %v591_v11 }
  0xf0   :  { %v586_v19 = vadd.f32 %v585_v15, %v584_v7 }
  0xf1   :  { %v594_v21 = vrot.slane %v593_v16, 1 }
  0xf2   :  { %v609_v22 = vadd.f32 %v602_v35, %v586_v19 }
  0xf3   :  { %v595_v24 = vadd.f32 %v594_v21, %v593_v16 }
  0xf4   :  { %v624_v31 = vrot.slane %v609_v22, 2 }
  0xf5   :  { %v610_v9 = vadd.f32 %v602_v35, %v595_v24 }
  0xf7   :  { %v625_v33 = vrot.slane %v610_v9, 1 }
  0xf9   :  { %v635_v42 = vsel %vm634_vm8, %v624_v31, %v625_v33 }
  0xfa   :  { %v637_v36 = vsel %vm636_vm9, %v633_v41, %v635_v42 }
  0xfb   :  { %v639_v37 = vsel %vm638_vm11, %v631_v43, %v637_v36 }
  0xfc   :  { %641 = vst [vmem:[#allocation3] sm:$0xff] %v639_v37 }
  0xfd   :  { %652 = dma.vmem_to_hbm [thread:$0]  %s648_s15, 128, %s650_s18, [#allocation4]  }
  0xfe   :  { %778 = dma.done.wait [#allocation4], 128  }
  0xff   :  { %779 = vsyncadd [#allocation4], 4294967168 }
 0x100   :  { %657 = vsyncpa [#allocation4], 1 }

</bundles_post_ra>
